<compile_context>
chip_gen: v7x
topology: tpu7x:2x2x1
jax: 0.10.0
libtpu: 0.0.40
codegen_flags: <defaults>
</compile_context>

<pallas_src>
import functools

import jax
import jax.numpy as jnp
from jax.experimental import pallas as pl
from jax.experimental.pallas import tpu as pltpu


def _round_up(x, m):
    return ((x + m - 1) // m) * m


def _focal_loss_kernel(logits_ref, tgt_ref, out_ref, *, gamma, hw_valid, tile_hw):
    # logits_ref: (C, T) float   (class = sublane axis, pixel = lane axis)
    # tgt_ref   : (1, T) int32
    # out_ref   : (1, T) float32 partial-sum accumulator for this batch index
    t = pl.program_id(1)

    @pl.when(t == 0)
    def _():
        out_ref[...] = jnp.zeros_like(out_ref)

    logits = logits_ref[...].astype(jnp.float32)            # (C, T)
    tgt = tgt_ref[...]                                       # (1, T)
    C, T = logits.shape

    # Numerically stable log-softmax over the class (sublane) axis.
    m = jnp.max(logits, axis=0, keepdims=True)               # (1, T)
    shifted = logits - m                                     # (C, T)
    e = jnp.exp(shifted)                                     # (C, T)
    sum_e = jnp.sum(e, axis=0, keepdims=True)                # (1, T)

    cls_idx = jax.lax.broadcasted_iota(jnp.int32, (C, T), 0)
    is_tgt = cls_idx == tgt                                  # (C, T) bool

    # Select the target row without materializing a dense float one-hot matmul.
    tgt_shifted = jnp.sum(jnp.where(is_tgt, shifted, 0.0), axis=0, keepdims=True)  # (1,T)
    e_tgt = jnp.sum(jnp.where(is_tgt, e, 0.0), axis=0, keepdims=True)              # (1,T)

    ce = jnp.log(sum_e) - tgt_shifted                        # (1, T)
    # pt = exp(-ce) == e_tgt / sum_e : reuse the exps already computed.
    pt = e_tgt * pl.reciprocal(sum_e, approx=False)          # (1, T)

    one_minus_pt = 1.0 - pt
    if isinstance(gamma, int):
        w = jax.lax.integer_pow(one_minus_pt, gamma)         # pure VPU multiplies
    else:
        w = one_minus_pt ** gamma                            # float-gamma fallback
    focal = w * ce                                           # (1, T)
    # alpha is None in the reference module -> no per-class scaling.

    # Mask out padded pixels so they contribute 0 to the sum.
    pix = t * tile_hw + jax.lax.broadcasted_iota(jnp.int32, (1, T), 1)
    focal = jnp.where(pix < hw_valid, focal, 0.0)

    out_ref[...] += focal


def focal_loss(logits_nchw, target_nhw, *, gamma=2, alpha=None,
               reduction="mean", tile_hw=16384):
    """logits_nchw: (N, C, H, W) float; target_nhw: (N, H, W) int."""
    N, C, H, W = logits_nchw.shape
    HW = H * W

    # Pixel tile: multiple of 128 lanes, capped to (rounded-up) HW.
    tile_hw = max(128, min(int(tile_hw), _round_up(HW, 128)))
    tile_hw = _round_up(tile_hw, 128)
    HWp = _round_up(HW, tile_hw)

    logits = logits_nchw.reshape(N, C, HW)                   # free view, no transpose
    targets = target_nhw.reshape(N, 1, HW).astype(jnp.int32)
    if HWp != HW:
        logits = jnp.pad(logits, ((0, 0), (0, 0), (0, HWp - HW)))
        targets = jnp.pad(targets, ((0, 0), (0, 0), (0, HWp - HW)))

    grid = (N, HWp // tile_hw)
    kernel = functools.partial(
        _focal_loss_kernel, gamma=gamma, hw_valid=HW, tile_hw=tile_hw)

    partials = pl.pallas_call(
        kernel,
        out_shape=jax.ShapeDtypeStruct((N, 1, tile_hw), jnp.float32),
        grid_spec=pltpu.PrefetchScalarGridSpec(
            num_scalar_prefetch=0,
            grid=grid,
            in_specs=[
                # (None, C, tile_hw): batch dim squeezed, pixels on lanes.
                pl.BlockSpec((None, C, tile_hw), lambda n, t: (n, 0, t)),
                pl.BlockSpec((None, 1, tile_hw), lambda n, t: (n, 0, t)),
            ],
            # Per-batch partial-sum block stays resident in VMEM across t.
            out_specs=pl.BlockSpec((None, 1, tile_hw), lambda n, t: (n, 0, 0)),
        ),
        compiler_params=pltpu.CompilerParams(
            # batch axis parallel (v7x megacore), pixel-tile axis is the
            # sequential accumulation axis.
            dimension_semantics=("parallel", "arbitrary")),
    )(logits, targets)

    total = jnp.sum(partials)                                # tiny final reduce
    if alpha is not None:
        total = alpha * total
    if reduction == "mean":
        return total / jnp.float32(N * HW)
    elif reduction == "sum":
        return total
    else:
        # TODO(synk): per-pixel ('none') output not aggregated by this kernel.
        raise NotImplementedError("reduction='none' not supported by this kernel")


def _reference_focal_loss(logits_nchw, target_nhw, gamma=2):
    # Pure-JAX reference matching F.cross_entropy(reduction='none') semantics.
    logits = jnp.transpose(logits_nchw, (0, 2, 3, 1)).astype(jnp.float32)
    lse = jax.nn.logsumexp(logits, axis=-1)
    tgt_logit = jnp.take_along_axis(logits, target_nhw[..., None], axis=-1)[..., 0]
    ce = lse - tgt_logit
    pt = jnp.exp(-ce)
    fl = (1.0 - pt) ** gamma * ce
    return jnp.mean(fl)


if __name__ == "__main__":
    key = jax.random.PRNGKey(0)

    # Case 1: HW is a multiple of the (capped) tile.
    k1, k2 = jax.random.split(key)
    N, C, H, W = 2, 4, 16, 16
    logits = jax.random.normal(k1, (N, C, H, W), dtype=jnp.float32)
    target = jax.random.randint(k2, (N, H, W), 0, C, dtype=jnp.int32)
    loss = jax.block_until_ready(focal_loss(logits, target, gamma=2))
    ref = _reference_focal_loss(logits, target, gamma=2)
    assert jnp.allclose(loss, ref, rtol=1e-5, atol=1e-6), (loss, ref)

    # Case 2: ragged HW (15*15=225) exercises the padding + validity-mask path.
    k3, k4 = jax.random.split(k2)
    N2, C2, H2, W2 = 2, 5, 15, 15
    logits2 = jax.random.normal(k3, (N2, C2, H2, W2), dtype=jnp.float32)
    target2 = jax.random.randint(k4, (N2, H2, W2), 0, C2, dtype=jnp.int32)
    loss2 = jax.block_until_ready(focal_loss(logits2, target2, gamma=2))
    ref2 = _reference_focal_loss(logits2, target2, gamma=2)
    assert jnp.allclose(loss2, ref2, rtol=1e-5, atol=1e-6), (loss2, ref2)

    print("KERNEL_OK")
</pallas_src>

<mosaic_0001>
module attributes {stable_mosaic.version = 11 : i64} {
  func.func @_focal_loss_kernel(%arg0: i32, %arg1: i32, %arg2: memref<1x4x256xf32, #tpu.memory_space<vmem>>, %arg3: memref<1x1x256xi32, #tpu.memory_space<vmem>>, %arg4: memref<1x1x256xf32, #tpu.memory_space<vmem>>) attributes {dimension_semantics = [#tpu.dimension_semantics<parallel>, #tpu.dimension_semantics<arbitrary>], iteration_bounds = array<i64: 2, 1>, scalar_prefetch = 0 : i64, scratch_operands = 0 : i64, tpu.core_type = #tpu.core_type<tc>, window_params = [{transform_indices = @transform_0, window_bounds = array<i64: 1, 4, 256>}, {transform_indices = @transform_1, window_bounds = array<i64: 1, 1, 256>}, {transform_indices = @transform_2, window_bounds = array<i64: 1, 1, 256>}]} {
    %c0_i32 = arith.constant 0 : i32
    %0 = arith.cmpi eq, %arg1, %c0_i32 : i32
    %1 = arith.extui %0 : i1 to i32
    %c0_i32_0 = arith.constant 0 : i32
    %2 = arith.cmpi ne, %1, %c0_i32_0 : i32
    scf.if %2 {
      %cst_20 = arith.constant 0.000000e+00 : f32
      %47 = vector.broadcast %cst_20 : f32 to vector<1x256xf32>
      %c0_21 = arith.constant 0 : index
      %c0_22 = arith.constant 0 : index
      %c0_23 = arith.constant 0 : index
      %48 = vector.load %arg4[%c0_21, %c0_22, %c0_23] : memref<1x1x256xf32, #tpu.memory_space<vmem>>, vector<1x1x256xf32>
      %49 = vector.shape_cast %48 : vector<1x1x256xf32> to vector<1x256xf32>
      %50 = vector.shape_cast %47 : vector<1x256xf32> to vector<1x1x256xf32>
      tpu.vector_store %arg4[%c0_21, %c0_22, %c0_23], %50 {strides = array<i32>} : memref<1x1x256xf32, #tpu.memory_space<vmem>>, vector<1x1x256xf32>,
    } else {
    }
    %c0 = arith.constant 0 : index
    %c0_1 = arith.constant 0 : index
    %c0_2 = arith.constant 0 : index
    %3 = vector.load %arg2[%c0, %c0_1, %c0_2] : memref<1x4x256xf32, #tpu.memory_space<vmem>>, vector<1x4x256xf32>
    %4 = vector.shape_cast %3 : vector<1x4x256xf32> to vector<4x256xf32>
    %c0_3 = arith.constant 0 : index
    %c0_4 = arith.constant 0 : index
    %c0_5 = arith.constant 0 : index
    %5 = vector.load %arg3[%c0_3, %c0_4, %c0_5] : memref<1x1x256xi32, #tpu.memory_space<vmem>>, vector<1x1x256xi32>
    %6 = vector.shape_cast %5 : vector<1x1x256xi32> to vector<1x256xi32>
    %cst = arith.constant dense<0xFF800000> : vector<256xf32>
    %7 = vector.multi_reduction <maximumf>, %4, %cst [0] : vector<4x256xf32> to vector<256xf32>
    %8 = vector.shape_cast %7 : vector<256xf32> to vector<1x256xf32>
    %9 = vector.broadcast %8 : vector<1x256xf32> to vector<4x256xf32>
    %10 = arith.subf %4, %9 : vector<4x256xf32>
    %11 = math.exp %10 : vector<4x256xf32>
    %cst_6 = arith.constant dense<0.000000e+00> : vector<256xf32>
    %12 = vector.multi_reduction <add>, %11, %cst_6 [0] : vector<4x256xf32> to vector<256xf32>
    %13 = vector.shape_cast %12 : vector<256xf32> to vector<1x256xf32>
    %14 = tpu.iota {dimensions = array<i32: 0>} : vector<4x256xi32>
    %15 = vector.broadcast %6 : vector<1x256xi32> to vector<4x256xi32>
    %16 = arith.cmpi eq, %14, %15 : vector<4x256xi32>
    %cst_7 = arith.constant 0.000000e+00 : f32
    %17 = vector.broadcast %cst_7 : f32 to vector<4x256xf32>
    %18 = arith.select %16, %10, %17 : vector<4x256xi1>, vector<4x256xf32>
    %cst_8 = arith.constant dense<0.000000e+00> : vector<256xf32>
    %19 = vector.multi_reduction <add>, %18, %cst_8 [0] : vector<4x256xf32> to vector<256xf32>
    %20 = vector.shape_cast %19 : vector<256xf32> to vector<1x256xf32>
    %cst_9 = arith.constant 0.000000e+00 : f32
    %21 = vector.broadcast %cst_9 : f32 to vector<4x256xf32>
    %22 = arith.select %16, %11, %21 : vector<4x256xi1>, vector<4x256xf32>
    %cst_10 = arith.constant dense<0.000000e+00> : vector<256xf32>
    %23 = vector.multi_reduction <add>, %22, %cst_10 [0] : vector<4x256xf32> to vector<256xf32>
    %24 = vector.shape_cast %23 : vector<256xf32> to vector<1x256xf32>
    %25 = math.log %13 : vector<1x256xf32>
    %26 = arith.subf %25, %20 : vector<1x256xf32>
    %27 = tpu.reciprocal %13 : vector<1x256xf32> -> vector<1x256xf32>
    %28 = arith.mulf %24, %27 : vector<1x256xf32>
    %cst_11 = arith.constant 1.000000e+00 : f32
    %29 = vector.broadcast %cst_11 : f32 to vector<1x256xf32>
    %30 = arith.subf %29, %28 : vector<1x256xf32>
    %31 = arith.mulf %30, %30 : vector<1x256xf32>
    %32 = arith.mulf %31, %26 : vector<1x256xf32>
    %c256_i32 = arith.constant 256 : i32
    %33 = arith.muli %arg1, %c256_i32 : i32
    %34 = tpu.iota {dimensions = array<i32: 1>} : vector<1x256xi32>
    %35 = vector.broadcast %33 : i32 to vector<1x256xi32>
    %36 = arith.addi %35, %34 : vector<1x256xi32>
    %c256_i32_12 = arith.constant 256 : i32
    %37 = vector.broadcast %c256_i32_12 : i32 to vector<1x256xi32>
    %38 = arith.cmpi slt, %36, %37 : vector<1x256xi32>
    %cst_13 = arith.constant 0.000000e+00 : f32
    %39 = vector.broadcast %cst_13 : f32 to vector<1x256xf32>
    %40 = arith.select %38, %32, %39 : vector<1x256xi1>, vector<1x256xf32>
    %c0_14 = arith.constant 0 : index
    %c0_15 = arith.constant 0 : index
    %c0_16 = arith.constant 0 : index
    %41 = vector.load %arg4[%c0_14, %c0_15, %c0_16] : memref<1x1x256xf32, #tpu.memory_space<vmem>>, vector<1x1x256xf32>
    %42 = vector.shape_cast %41 : vector<1x1x256xf32> to vector<1x256xf32>
    %43 = arith.addf %42, %40 : vector<1x256xf32>
    %c0_17 = arith.constant 0 : index
    %c0_18 = arith.constant 0 : index
    %c0_19 = arith.constant 0 : index
    %44 = vector.load %arg4[%c0_17, %c0_18, %c0_19] : memref<1x1x256xf32, #tpu.memory_space<vmem>>, vector<1x1x256xf32>
    %45 = vector.shape_cast %44 : vector<1x1x256xf32> to vector<1x256xf32>
    %46 = vector.shape_cast %43 : vector<1x256xf32> to vector<1x1x256xf32>
    tpu.vector_store %arg4[%c0_17, %c0_18, %c0_19], %46 {strides = array<i32>} : memref<1x1x256xf32, #tpu.memory_space<vmem>>, vector<1x1x256xf32>,
    return
  }
  func.func @transform_0(%arg0: i32, %arg1: i32) -> (i32, i32, i32) {
    %c0_i32 = arith.constant 0 : i32
    %c0_i32_0 = arith.constant 0 : i32
    return %arg0, %c0_i32, %arg1 : i32, i32, i32
  }
  func.func @transform_1(%arg0: i32, %arg1: i32) -> (i32, i32, i32) {
    %c0_i32 = arith.constant 0 : i32
    %c0_i32_0 = arith.constant 0 : i32
    return %arg0, %c0_i32, %arg1 : i32, i32, i32
  }
  func.func @transform_2(%arg0: i32, %arg1: i32) -> (i32, i32, i32) {
    %c0_i32 = arith.constant 0 : i32
    %c0_i32_0 = arith.constant 0 : i32
    %c0_i32_1 = arith.constant 0 : i32
    return %arg0, %c0_i32, %c0_i32_0 : i32, i32, i32
  }
}

</mosaic_0001>

<bundles_post_ra>
// kernel: tpu_custom_call.1
= control target key start
LH: loop header
LB: loop body
LE: loop exit
PB: predicated region body
PF: predicated region fallthrough
CT: control target
= control target key end

     0   :  { %7 = vsyncpa [#allocation3], 0  ;;  %s1008_s0 = inlined_call_operand.hbm [shape: f32[2,4,256], index: 0, kind: input, shape index: {}]   ;;  %s1009_s1 = inlined_call_operand.hbm [shape: s32[2,1,256], index: 1, kind: input, shape index: {}]   ;;  %s1010_s2 = inlined_call_operand.hbm [shape: f32[2,1,256], index: 2, kind: output, shape index: {}]  }
   0x1   :  { %9 = vsyncpa [#allocation3 + $0x1], 0 }
   0x2   :  { %10 = vsyncpa [#allocation6], 0 }
   0x3   :  { %12 = vsyncpa [#allocation6 + $0x1], 0 }
   0x4   :  { %13 = vsyncpa [#allocation4], 0 }
   0x5   :  { %15 = vsyncpa [#allocation4 + $0x1], 0  ;;  %s764_s9 = smov 0   ;;  %s766_s10 = smov 0  }
   0x6   :  { %s768_s11 = smov 0   ;;  %s770_s12 = smov 0  }
   0x7   :  { %s772_s13 = smov 0   ;;  %s774_s14 = smov 0  }
   0x8 LB: > { %s494_s15 = sadd.s32 4294967295, %s742_s14   ;;  %s495_s16 = sadd.s32 4294967294, %s742_s14   ;;  %s742_s14 = sphi %s774_s14, %s21_s14   ;;  %s738_s13 = sphi %s772_s13, %s1032_s13   ;;  %s734_s12 = sphi %s770_s12, %s1031_s12   ;;  %s730_s11 = sphi %s768_s11, %s1030_s11   ;;  %s726_s10 = sphi %s766_s10, %s1029_s10   ;;  %s722_s9 = sphi %s764_s9, %s1028_s9  }
   0x9   : > { %s33_s17 = sadd.s32 1, %s738_s13  ;;  %s42_s18 = sadd.s32 1, %s730_s11 }
   0xa   : > { %p35_p0 = scmp.ge.s32.totalorder %s33_s17, 2  ;;  %p49_p1 = scmp.ne.s32.totalorder %s730_s11, %s726_s10 }
   0xb   : > { %p50_p2 = scmp.eq.s32.totalorder %s742_s14, 0  ;;  %p55_p3 = scmp.ne.s32.totalorder %s726_s10, %s722_s9 }
   0xc   : > { %s1034_s17 = smov (%p35_p0, %s33_s17), 0  ;;  %p56_p5 = scmp.eq.s32.totalorder %s494_s15, 0 }
   0xd   : > { %p805_p4 = por %p50_p2, %p49_p1  ;;  %s37_s20 = ssub.s32 %s738_s13, %s1034_s17 }
   0xe   : > { %p107_p6 = scmp.eq.s32.totalorder %s494_s15, 1  ;;  %p40_p7 = scmp.eq.s32.totalorder %s37_s20, 0 }
   0xf   : > { %p811_p8 = por %p56_p5, %p55_p3  ;;  %p113_p10 = scmp.eq.s32.totalorder %s495_s16, 1 }
  0x10   : > { %p815_p9 = por %p107_p6, %p49_p1  ;;  %p533_p13 = scmp.lt.s32.totalorder %s742_s14, 2 }
  0x11   : > { %s1014_s21 = scalar_select %p811_p8, 1, 0 }
  0x12   : > { %s1015_s22 = scalar_select %p815_p9, 1, 0 }
  0x13   : > { %s820_s23 = scalar_select %p40_p7, %s730_s11, %s42_s18  }
  0x14   : > { %p822_p11 = por %p113_p10, %p55_p3  ;;  %s829_s25 = sand.u32 1, %s730_s11  }
  0x15   : > { %s498_s26 = sshll.u32 %s829_s25, 3  ;;  %s513_s27 = sshll.u32 %s738_s13, 7 }
  0x16   : > { %s1016_s24 = scalar_select %p822_p11, 1, 0 }
  0x17   : > { %s836_s30 = scalar_lea.hbm %s1008_s0, %s513_s27  ;;  %s137_s3 = scalar_lea.vmem [#allocation2], %s498_s26 }
  0x18   : > { %s147_s4 = sshll.u32 %s137_s3, 4  ;;  %p842_p0 = pnand %p533_p13, %p805_p4  ;;  %s838_s4 = int_to_ptr.vmem [resolvable:$true] %s147_s4 }
  0x19   : > { %s134_s6 = scalar_lea.sflag [#allocation3], %s829_s25  ;;  %s596_s7 = scalar_lea.hbm %s836_s30, 128 }
  0x1a   : > { %p597_p3 = scmp.ne.s32.totalorder %s836_s30, %s596_s7  ;;  %p598_p5 = pneg %p842_p0 }
  0x1b   : > { %s601_s16 = scalar_lea.hbm %s1008_s0, 256  ;;  %p602_p4 = scmp.lt.u32.totalorder %s836_s30, %s1008_s0 }
  0x1c   : > { %p599_p6 = pnand %p598_p5, %p597_p3  ;;  %p603_p10 = scmp.lt.u32.totalorder %s601_s16, %s596_s7 }
  0x1d   : > { %p605_p12 = scmp.lt.u32.totalorder %s596_s7, %s836_s30 }
  0x1e   : > { %p600_p7 = pneg %p599_p6  ;;  %p604_p13 = por %p603_p10, %p602_p4 }
  0x20   : > { %p606_p1 = por %p605_p12, %p604_p13 }
  0x22   : > { %p607_p2 = pnand %p606_p1, %p600_p7 }
  0x24   : > { %610 = shalt.err (!%p607_p2)
}
  0x25   : > { %s611_s20 = scalar_lea.vmem %s838_s4, 128  ;;  %s744_s26 = smov [#allocation2]  }
  0x26   : > { %p612_p3 = scmp.ne.s32.totalorder %s838_s4, %s611_s20  ;;  %s616_s27 = sshll.u32 %s744_s26, 4  ;;  %s617_s27 = int_to_ptr.vmem [resolvable:$false] %s616_s27 }
  0x27   : > { %s618_s28 = scalar_lea.vmem %s617_s27, 256  ;;  %p619_p9 = scmp.lt.s32.totalorder %s838_s4, %s617_s27 }
  0x28   : > { %p614_p6 = pnand %p612_p3, %p598_p5  ;;  %p620_p4 = scmp.lt.s32.totalorder %s618_s28, %s611_s20 }
  0x2a   : > { %p615_p11 = pneg %p614_p6  ;;  %p621_p10 = por %p620_p4, %p619_p9 }
  0x2c   : > { %p622_p12 = pnand %p621_p10, %p615_p11 }
  0x2e   : > { %625 = shalt.err (!%p622_p12)
}
  0x2f   : > { %525 = dma.hbm_to_vmem [thread:$0]  (!%p842_p0), %s836_s30, 128, %s838_s4, %s134_s6  }
  0x30   : > { %p1018_p1 = scmp.lt.s32.totalorder %s742_s14, 3  ;;  %p1019_p2 = scmp.ge.s32.totalorder %s742_s14, 1 }
  0x31   : > { %s501_s3 = sshll.u32 %s829_s25, 1  ;;  %s514_s7 = sshll.u32 %s738_s13, 5 }
  0x32   : > { %p878_p7 = pnand %p1019_p2, %p1018_p1  ;;  %s887_s16 = scalar_lea.hbm %s1009_s1, %s514_s7 }
  0x33   : > { %s158_s18 = scalar_lea.vmem [#allocation5], %s501_s3  ;;  %s155_s30 = scalar_lea.sflag [#allocation6], %s829_s25 }
  0x34   : > { %s1020_s29 = scalar_select %p878_p7, 1, 0 }
  0x35   : > { %s168_s19 = sshll.u32 %s158_s18, 4  ;;  %s626_s4 = scalar_lea.hbm %s887_s16, 32  ;;  %s169_s19 = int_to_ptr.vmem [resolvable:$true] %s168_s19 }
  0x36   : > { %p627_p9 = scmp.ne.s32.totalorder %s887_s16, %s626_s4  ;;  %s631_s26 = scalar_lea.hbm %s1009_s1, 64 }
  0x37   : > { %p632_p3 = scmp.lt.u32.totalorder %s887_s16, %s1009_s1  ;;  %p633_p6 = scmp.lt.u32.totalorder %s631_s26, %s626_s4 }
  0x38   : > { %p629_p11 = pnand %p627_p9, %p598_p5  ;;  %p635_p10 = scmp.lt.u32.totalorder %s626_s4, %s887_s16 }
  0x39   : > { %p634_p4 = por %p633_p6, %p632_p3 }
  0x3a   : > { %p630_p13 = pneg %p629_p11 }
  0x3b   : > { %p636_p12 = por %p635_p10, %p634_p4 }
  0x3d   : > { %p637_p1 = pnand %p636_p12, %p630_p13 }
  0x3f   : > { %640 = shalt.err (!%p637_p1)
}
  0x40   : > { %s641_s25 = scalar_lea.vmem %s169_s19, 32  ;;  %s745_s3 = smov [#allocation5]  }
  0x41   : > { %p642_p2 = scmp.ne.s32.totalorder %s169_s19, %s641_s25  ;;  %s646_s7 = sshll.u32 %s745_s3, 4  ;;  %s647_s7 = int_to_ptr.vmem [resolvable:$false] %s646_s7 }
  0x42   : > { %s648_s8 = scalar_lea.vmem %s647_s7, 64  ;;  %p649_p8 = scmp.lt.s32.totalorder %s169_s19, %s647_s7 }
  0x43   : > { %p644_p9 = pnand %p642_p2, %p598_p5  ;;  %p650_p7 = scmp.lt.s32.totalorder %s648_s8, %s641_s25 }
  0x45   : > { %p645_p11 = pneg %p644_p9  ;;  %p651_p3 = por %p650_p7, %p649_p8 }
  0x47   : > { %p652_p6 = pnand %p651_p3, %p645_p11 }
  0x49   : > { %655 = shalt.err (!%p652_p6)
}
  0x4a   : > { %528 = dma.hbm_to_vmem [thread:$0]  (!%p842_p0), %s887_s16, 32, %s169_s19, %s155_s30  }
  0x4b   : > { %p1021_p13 = scmp.ne.s32.totalorder %s1020_s29, 0 }
  0x4c   : > { %s912_s15 = sand.u32 (!%p1021_p13), 1, %s726_s10   ;;  %p1022_p5 = scmp.ne.s32.totalorder (!%p1021_p13), %s1014_s21, 0 }
  0x4d   : > { %177 = sbr.rel (%p1021_p13) target bundleno = 178 (0xb2), region = 28  ;;  %s505_s18 = sshll.u32 (!%p1021_p13), %s912_s15, 3 }
  0x4e   : > { %s180_s4 = scalar_lea.sflag (!%p1021_p13), [#allocation3], %s912_s15  ;;  %s183_s6 = scalar_lea.vmem (!%p1021_p13), [#allocation2], %s505_s18 }
  0x54   : > { %709 = dma.done.wait (%p1022_p5), %s180_s4, 128  }
  0x55   : > { %711 = vsyncadd (%p1022_p5), %s180_s4, 4294967168  ;;  %s506_s5 = sshll.u32 %s912_s15, 1  ;;  %s189_s29 = scalar_lea.sflag [#allocation6], %s912_s15 }
  0x56   : > { %s192_s16 = scalar_lea.vmem [#allocation5], %s506_s5 }
  0x57   : > { %713 = dma.done.wait (%p1022_p5), %s189_s29, 32  }
  0x58   : > { %715 = vsyncadd (%p1022_p5), %s189_s29, 4294967264  ;;  %v224_v0 = vlaneseq  ;;  %s930_s19 = scalar_lea.vmem [#allocation7], %s506_s5  ;;  %v746_v2 = vmov 0.0   ;;  %vm234_vm1 = vcmask 1043456   ;;  %v229_v3 = vld [vmem:[%s183_s6] sm:$0xff]  ;;  %s515_s21 = sshll.u32 %s734_s12, 5 }
  0x59   : > { %v232_v4 = vcombine.high %v229_v3, %v229_v3  ;;  %v235_v5 = vsel %vm234_vm1, %v229_v3, -inf  ;;  %v230_v24 = vld [vmem:[%s192_s16] sm:$0x3]  ;;  %s387_s30 = sshll.u32 %s930_s19, 4  ;;  %s956_s27 = scalar_lea.hbm %s1010_s2, %s515_s21  ;;  %s958_s30 = int_to_ptr.vmem [resolvable:$true] %s387_s30 }
  0x5a   : > { %vm926_vm0 = vcmp.lt.s32.totalorder %v224_v0, 256  ;;  %v236_v6 = vrot.slane %v235_v5, 4  ;;  %v937_v20 = vshrl.u32 %v224_v0, 7  ;;  %s373_s28 = scalar_lea.sflag [#allocation4], %s912_s15  ;;  %s656_s25 = scalar_lea.vmem %s958_s30, 32 }
  0x5b   : > { %228 = vst.msk [vmem:[%s930_s19] sm:$0x3] %vm926_vm0, %v746_v2  ;;  %v242_v7 = vsel %vm234_vm1, %v232_v4, -inf  ;;  %p657_p8 = scmp.ne.s32.totalorder %s958_s30, %s656_s25  ;;  %p1025_p0 = scmp.ne.s32.totalorder %s1015_s22, 0 }
  0x5c   : > { %v237_v8 = vmax.f32 %v235_v5, %v236_v6  ;;  %v243_v9 = vrot.slane %v242_v7, 4  ;;  %v277_v23 = vsub.s32 0, %v937_v20  ;;  %v281_v25 = vsub.s32 1, %v937_v20  ;;  %s748_s12 = smov [#allocation7]  }
  0x5d   : > { %p658_p7 = pnand %p657_p8, %p1025_p0  ;;  %s660_s3 = sshll.u32 %s748_s12, 4  ;;  %s661_s3 = int_to_ptr.vmem [resolvable:$false] %s660_s3 }
  0x5e   : > { %v238_v10 = vrot.slane %v237_v8, 2  ;;  %v244_v11 = vmax.f32 %v242_v7, %v243_v9  ;;  %v278_v26 = vrot.slane %v230_v24, %v277_v23  ;;  %v282_v27 = vrot.slane %v230_v24, %v281_v25  ;;  %s662_s7 = scalar_lea.vmem %s661_s3, 64  ;;  %p663_p10 = scmp.lt.s32.totalorder %s958_s30, %s661_s3 }
  0x5f   : > { %p659_p4 = pneg %p658_p7  ;;  %p664_p12 = scmp.lt.s32.totalorder %s662_s7, %s656_s25 }
  0x60   : > { %v239_v12 = vmax.f32 %v237_v8, %v238_v10  ;;  %v245_v13 = vrot.slane %v244_v11, 2  ;;  %vm283_vm2 = vcmp.eq.s32.totalorder %v937_v20, %v278_v26  ;;  %vm284_vm3 = vcmp.eq.s32.totalorder %v937_v20, %v282_v27 }
  0x61   : > { %p665_p1 = por %p664_p12, %p663_p10 }
  0x62   : > { %v240_v14 = vrot.slane %v239_v12, 1  ;;  %v246_v15 = vmax.f32 %v244_v11, %v245_v13 }
  0x63   : > { %p666_p2 = pnand %p665_p1, %p659_p4 }
  0x64   : > { %v241_v16 = vmax.f32 %v239_v12, %v240_v14  ;;  %v247_v17 = vrot.slane %v246_v15, 1 }
  0x66   : > { %v248_v18 = vmax.f32 %v246_v15, %v247_v17 }
  0x68   : > { %v251_v19 = vcombine.low %v241_v16, %v248_v18 }
  0x6a   : > { %v253_v21 = vsub.f32 %v229_v3, %v251_v19  ;;  %v747_v19 = vmov 1966171168  }
  0x6c   : > { %v254_v22 = vmul.f32 1.442695, %v253_v21  ;;  %v286_v28 = vcombine.high %v253_v21, %v253_v21  ;;  %v288_v29 = vsel %vm283_vm2, %v253_v21, 0.0  ;;  %v352_v21 = vunpack.c.l.s4 %v747_v19 }
  0x6d   : > { %v290_v34 = vsel %vm234_vm1, %v288_v29, 0.0 }
  0x6e   : > { %586 = vpow2.f32 %v254_v22  ;;  %v289_v31 = vsel %vm284_vm3, %v286_v28, 0.0  ;;  %v291_v44 = vrot.slane %v290_v34, 4 }
  0x6f   : > { %v297_v39 = vsel %vm234_vm1, %v289_v31, 0.0 }
  0x70   : > { %v298_v49 = vrot.slane %v297_v39, 4  ;;  %v292_v53 = vadd.f32 %v291_v44, %v290_v34 }
  0x72   : > { %v299_v57 = vadd.f32 %v298_v49, %v297_v39  ;;  %v293_v61 = vrot.slane %v292_v53, 2 }
  0x74   : > { %v300_v0 = vrot.slane %v299_v57, 2  ;;  %v294_v3 = vadd.f32 %v293_v61, %v292_v53 }
  0x76   : > { %v301_v5 = vadd.f32 %v300_v0, %v299_v57  ;;  %v295_v7 = vrot.slane %v294_v3, 1 }
  0x78   : > { %v587_v30 = vpop.eup %586  ;;  %v302_v9 = vrot.slane %v301_v5, 1  ;;  %v296_v12 = vadd.f32 %v295_v7, %v294_v3 }
  0x79   : > { %v257_v32 = vcombine.high %v587_v30, %v587_v30  ;;  %v259_v33 = vsel %vm234_vm1, %v587_v30, 0.0  ;;  %v304_v35 = vsel %vm283_vm2, %v587_v30, 0.0  ;;  %v353_v30 = vunpack.c.0.s8 %v352_v21 }
  0x7a   : > { %v260_v36 = vrot.slane %v259_v33, 4  ;;  %v306_v37 = vsel %vm234_vm1, %v304_v35, 0.0  ;;  %v303_v17 = vadd.f32 %v302_v9, %v301_v5 }
  0x7b   : > { %v266_v38 = vsel %vm234_vm1, %v257_v32, 0.0  ;;  %v305_v40 = vsel %vm284_vm3, %v257_v32, 0.0  ;;  %v307_v41 = vrot.slane %v306_v37, 4  ;;  %v356_v34 = vsub.s32 %v353_v30, %v937_v20 }
  0x7c   : > { %v261_v42 = vadd.f32 %v260_v36, %v259_v33  ;;  %v267_v43 = vrot.slane %v266_v38, 4  ;;  %v313_v45 = vsel %vm234_vm1, %v305_v40, 0.0 }
  0x7d   : > { %v314_v46 = vrot.slane %v313_v45, 4  ;;  %v308_v50 = vadd.f32 %v307_v41, %v306_v37  ;;  %v347_v37 = vld [vmem:[%s930_s19] sm:$0x3] }
  0x7e   : > { %v262_v47 = vrot.slane %v261_v42, 2  ;;  %v268_v48 = vadd.f32 %v267_v43, %v266_v38 }
  0x7f   : > { %v315_v54 = vadd.f32 %v314_v46, %v313_v45  ;;  %v309_v58 = vrot.slane %v308_v50, 2 }
  0x80   : > { %v263_v51 = vadd.f32 %v262_v47, %v261_v42  ;;  %v269_v52 = vrot.slane %v268_v48, 2 }
  0x81   : > { %v316_v62 = vrot.slane %v315_v54, 2  ;;  %v310_v2 = vadd.f32 %v309_v58, %v308_v50 }
  0x82   : > { %v264_v55 = vrot.slane %v263_v51, 1  ;;  %v270_v56 = vadd.f32 %v269_v52, %v268_v48 }
  0x83   : > { %v317_v4 = vadd.f32 %v316_v62, %v315_v54  ;;  %v311_v6 = vrot.slane %v310_v2, 1 }
  0x84   : > { %v265_v59 = vadd.f32 %v264_v55, %v263_v51  ;;  %v271_v60 = vrot.slane %v270_v56, 1 }
  0x85   : > { %v318_v8 = vrot.slane %v317_v4, 1  ;;  %v312_v10 = vadd.f32 %v311_v6, %v310_v2 }
  0x86   : > { %v272_v63 = vadd.f32 %v271_v60, %v270_v56  ;;  %588 = vlog2.f32 %v265_v59 }
  0x87   : > { %590 = vrcp.f32 %v265_v59  ;;  %v319_v13 = vadd.f32 %v318_v8, %v317_v4 }
  0x88   : > { %592 = vlog2.f32 %v272_v63 }
  0x89   : > { %594 = vrcp.f32 %v272_v63 }
  0x90   : > { %v589_v11 = vpop.eup %588 }
  0x91   : > { %v591_v14 = vpop.eup %590  ;;  %v321_v15 = vmul.f32 0.6931472, %v589_v11 }
  0x92   : > { %v593_v16 = vpop.eup %592  ;;  %v328_v18 = vmul.f32 %v591_v14, %v312_v10 }
  0x93   : > { %v595_v22 = vpop.eup %594  ;;  %v323_v23 = vmul.f32 0.6931472, %v593_v16  ;;  %v324_v24 = vsub.f32 %v321_v15, %v296_v12 }
  0x94   : > { %v329_v25 = vmul.f32 %v595_v22, %v319_v13  ;;  %v330_v26 = vsub.f32 1.0, %v328_v18 }
  0x95   : > { %v325_v27 = vsub.f32 %v323_v23, %v303_v17 }
  0x96   : > { %v331_v28 = vsub.f32 1.0, %v329_v25  ;;  %v332_v29 = vmul.f32 %v330_v26, %v330_v26 }
  0x98   : > { %v333_v31 = vmul.f32 %v331_v28, %v331_v28  ;;  %v334_v32 = vmul.f32 %v332_v29, %v324_v24 }
  0x9a   : > { %v335_v33 = vmul.f32 %v333_v31, %v325_v27 }
  0x9c   : > { %v350_v35 = vcombine.low %v334_v32, %v335_v33 }
  0x9e   : > { %v357_v36 = vrot.slane %v350_v35, %v356_v34 }
  0xa0   : > { %v364_v38 = vrot.slane %v357_v36, %v356_v34 }
  0xa2   : > { %v366_v39 = vadd.f32 %v364_v38, %v347_v37 }
  0xa4   : > { %371 = vst.msk [vmem:[%s930_s19] sm:$0x3] %vm926_vm0, %v366_v39 }
  0xa5   : > { %669 = shalt.err (!%p666_p2)
}
  0xa6   : > { %s670_s8 = scalar_lea.hbm %s956_s27, 32  ;;  %s674_s4 = scalar_lea.hbm %s1010_s2, 64 }
  0xa7   : > { %p671_p9 = scmp.ne.s32.totalorder %s956_s27, %s670_s8  ;;  %p675_p6 = scmp.lt.u32.totalorder %s956_s27, %s1010_s2 }
  0xa8   : > { %p676_p13 = scmp.lt.u32.totalorder %s674_s4, %s670_s8  ;;  %p678_p8 = scmp.lt.u32.totalorder %s670_s8, %s956_s27 }
  0xa9   : > { %p672_p11 = pnand %p671_p9, %p1025_p0 }
  0xaa   : > { %p677_p5 = por %p676_p13, %p675_p6 }
  0xab   : > { %p673_p3 = pneg %p672_p11 }
  0xac   : > { %p679_p7 = por %p678_p8, %p677_p5 }
  0xae   : > { %p680_p4 = pnand %p679_p7, %p673_p3 }
  0xb0   : > { %683 = shalt.err (!%p680_p4)
}
  0xb1   : > { %520 = dma.vmem_to_hbm [thread:$0]  (%p1025_p0), %s958_s30, 32, %s956_s27, %s373_s28  }
  0xb2 PF: > { %s399_s29 = sand.u32 1, %s722_s9   ;;  %p1026_p10 = scmp.ne.s32.totalorder %s1016_s24, 0 }
  0xb3   : > { %p1027_p12 = scmp.ge.s32.totalorder %s742_s14, 2  ;;  %s400_s16 = scalar_lea.sflag [#allocation4], %s399_s29 }
  0xb5   : > { %p530_p1 = pnand %p1027_p12, %p1026_p10 }
  0xb7   : > { %717 = dma.done.wait (!%p530_p1), %s400_s16, 32  }
  0xb8   : > { %719 = vsyncadd (!%p530_p1), %s400_s16, 4294967264  ;;  %s21_s14 = sadd.s32 1, %s742_s14   ;;  %s1028_s9 = smov %s726_s10 }
  0xb9   : > { %p18_p2 = scmp.ge.s32.totalorder %s21_s14, 4   ;;  %s1029_s10 = smov %s730_s11 }
  0xba   : > { %s1030_s11 = smov %s820_s23  ;;  %s1031_s12 = smov %s738_s13 }
  0xbb   : > { %s1032_s13 = smov %s1034_s17  ;;  %20 = sbr.rel (!%p18_p2) target bundleno = 8 (0x8), region = 90 }
  0xc2   :  { %405 = vsyncpa [#allocation3], 1 }
  0xc3   :  { %407 = vsyncpa [#allocation3 + $0x1], 1 }
  0xc4   :  { %408 = vsyncpa [#allocation6], 1 }
  0xc5   :  { %410 = vsyncpa [#allocation6 + $0x1], 1 }
  0xc6   :  { %411 = vsyncpa [#allocation4], 1 }
  0xc7   :  { %413 = vsyncpa [#allocation4 + $0x1], 1 }

</bundles_post_ra>
